<compile_context>
chip_gen: v7x
topology: tpu7x:2x2x1
jax: 0.10.0
libtpu: 0.0.40
codegen_flags: <defaults>
</compile_context>

<pallas_src>
import functools
import math

import jax
import jax.numpy as jnp
import numpy as np
from jax import lax
from jax.experimental import pallas as pl
from jax.experimental.pallas import tpu as pltpu

_SELU_ALPHA = 1.6732632423543772848170429916717
_SELU_SCALE = 1.0507009873554804934193349852946


def _round_up(x, m):
    return (x + m - 1) // m * m


# ---------------------------------------------------------------------------
# Pallas kernel: one grid step = one image.
#   x_ref : (1, Hv, Lin)        bf16   padded activation rows (lane-dense)
#   w_ref : (n_off, Lin, Nout)  bf16   banded weight (conv gather folded in)
#   b_ref : (1, Nout)           f32    bias broadcast over output positions
#   o_ref : (1, rows, Nout)     bf16/f32
# out[r] = SELU( sum_o x[r + o] @ w[o] + b )
# ---------------------------------------------------------------------------
def _band_conv_selu_kernel(x_ref, w_ref, b_ref, o_ref, *, rows, n_off):
    x = x_ref[0]                                            # (Hv, Lin) bf16
    acc = jnp.dot(x[0:rows, :], w_ref[0],
                  preferred_element_type=jnp.float32)
    for o in range(1, n_off):                               # static unroll (2 or 3)
        acc = acc + jnp.dot(x[o:o + rows, :], w_ref[o],
                            preferred_element_type=jnp.float32)
    acc = acc + b_ref[...]                                  # f32 bias
    neg = _SELU_ALPHA * (jnp.exp(jnp.minimum(acc, 0.0)) - 1.0)
    o_ref[0] = (_SELU_SCALE * jnp.where(acc > 0.0, acc, neg)).astype(o_ref.dtype)


def _padded_bytes(shape, itemsize):
    """VMEM footprint estimate with (8,128) tile padding on the last two dims."""
    *lead, s, l = shape
    n = itemsize * _round_up(max(s, 1), 8) * _round_up(max(l, 1), 128)
    for d in lead:
        n *= max(d, 1)
    return n


def _band_matmul_selu(xflat, wband, b_row, *, rows, n_off, out_dtype):
    """out[b, r, :] = SELU(sum_o xflat[b, r+o, :] @ wband[o] + b_row) via Pallas."""
    B, Hv, Lin = xflat.shape
    n_off_w, Lin_w, Nout = wband.shape
    assert n_off_w == n_off and Lin_w == Lin and Hv >= rows + n_off - 1

    kernel = functools.partial(_band_conv_selu_kernel, rows=rows, n_off=n_off)

    out_isize = jnp.dtype(out_dtype).itemsize
    need = (2 * _padded_bytes((1, Hv, Lin), 2)
            + _padded_bytes((n_off, Lin, Nout), 2)
            + _padded_bytes((1, Nout), 4)
            + 2 * _padded_bytes((1, rows, Nout), out_isize))
    # v7x has 64 MiB physical VMEM per TensorCore -> clamp to 48 MiB for headroom.
    vmem_limit = int(min(48 * 1024 * 1024, max(16 * 1024 * 1024, 3 * need)))

    return pl.pallas_call(
        kernel,
        out_shape=jax.ShapeDtypeStruct((B, rows, Nout), out_dtype),
        grid=(B,),
        in_specs=[
            pl.BlockSpec((1, Hv, Lin), lambda b: (b, 0, 0)),
            pl.BlockSpec((n_off, Lin, Nout), lambda b: (0, 0, 0)),   # resident weight
            pl.BlockSpec((1, Nout), lambda b: (0, 0)),
        ],
        out_specs=pl.BlockSpec((1, rows, Nout), lambda b: (b, 0, 0)),
        compiler_params=pltpu.CompilerParams(
            dimension_semantics=("parallel",),
            vmem_limit_bytes=vmem_limit),
    )(xflat.astype(jnp.bfloat16), wband, b_row)


# ---------------------------------------------------------------------------
# Band-weight construction (done once in prepare_params, numpy).
# ---------------------------------------------------------------------------
def _build_enc_band(w, b, H, W):
    """Conv2d(Cin->Cout, k=3, s=2, p=1) on an (H, W) input.

    Input to the kernel is the padded image in row-PAIR view: xflat row p holds
    padded rows (2p, 2p+1) flattened to 2*Wp*Cin lanes.  Output matmul row y needs
    padded rows 2y..2y+2 -> row-pair offsets {0, 1}.  The column gather lives in
    the band: w[co,ci,i,j] sits at row  (i%2)*Wp*Cin + (2x+j)*Cin + ci  of band
    (i//2), column x*Cout + co.
    """
    Cout, Cin, KH, KW = w.shape
    assert KH == 3 and KW == 3 and H % 2 == 0 and W % 2 == 0
    Hp, Wp = H + 2, W + 2
    Ho, Wo = H // 2, W // 2
    Lrow = Wp * Cin
    Lin = 2 * Lrow
    Nout = Wo * Cout
    w_np = np.asarray(w, np.float32)
    wb = np.zeros((2, Lin, Nout), np.float32)
    xs = np.arange(Wo)
    cols = xs * Cout
    for i in range(3):
        off, sub = i // 2, i % 2
        for j in range(3):
            rows = sub * Lrow + (2 * xs + j) * Cin
            for ci in range(Cin):
                for co in range(Cout):
                    wb[off, rows + ci, cols + co] = w_np[co, ci, i, j]
    b_row = np.tile(np.asarray(b, np.float32), Wo)[None, :]
    meta = dict(H=H, W=W, Cin=Cin, Cout=Cout, Ho=Ho, Wo=Wo, n_off=2, rows=Ho)
    return (jnp.asarray(wb, jnp.bfloat16), jnp.asarray(b_row, jnp.float32), meta)


def _build_dec_band(w, b, H, W):
    """ConvTranspose2d(Cin->Cout, k=4, s=2, p=1) on an (H, W) input.

    Input to the kernel is the 1-zero-padded image, one padded row per xflat row
    (Wpin*Cin lanes).  Matmul row r produces BOTH output rows 2r and 2r+1
    concatenated (Nout = 2 * 2W * Cout lanes), so the row pixel-shuffle is a free
    row-major reshape of the output; the column shuffle is in the band columns.
    out[2r+ry, 2q+rx, co] += in[y, x, ci] * w[ci, co, ky, kx]
    with  y = r + m - 1  (m = band offset 0..2), x = q + dx, padded col = x + 1.
    """
    Cin, Cout, KH, KW = w.shape
    assert KH == 4 and KW == 4
    Wpin = W + 2
    Lin = Wpin * Cin
    Wout = 2 * W
    Nout = 2 * Wout * Cout
    w_np = np.asarray(w, np.float32)
    wb = np.zeros((3, Lin, Nout), np.float32)
    qs = np.arange(W)
    row_taps = {0: [(1, 1), (3, 0)], 1: [(0, 2), (2, 1)]}    # ry -> [(ky, m)]
    col_taps = {0: [(1, 0), (3, -1)], 1: [(0, 1), (2, 0)]}   # rx -> [(kx, dx)]
    for ry, kms in row_taps.items():
        for (ky, m) in kms:
            for rx, kds in col_taps.items():
                for (kx, dx) in kds:
                    x = qs + dx                              # -1 / W hit the zero pad
                    rows = (x + 1) * Cin
                    cols = ry * (Wout * Cout) + (2 * qs + rx) * Cout
                    for ci in range(Cin):
                        for co in range(Cout):
                            wb[m, rows + ci, cols + co] = w_np[ci, co, ky, kx]
    b_row = np.tile(np.asarray(b, np.float32), 2 * Wout)[None, :]
    meta = dict(H=H, W=W, Cin=Cin, Cout=Cout, Hout=2 * H, Wout=Wout, n_off=3, rows=H)
    return (jnp.asarray(wb, jnp.bfloat16), jnp.asarray(b_row, jnp.float32), meta)


def prepare_params(params, img_size):
    """One-time band-weight / bias-row construction + bf16 cast."""
    enc, H = [], img_size
    for (w, b) in params["enc"]:
        enc.append(_build_enc_band(np.asarray(w), np.asarray(b), H, H))
        H //= 2
    dec = []
    for (w, b) in params["dec"]:
        dec.append(_build_dec_band(np.asarray(w), np.asarray(b), H, H))
        H *= 2
    return {"enc": enc, "dec": dec}


# ---------------------------------------------------------------------------
# Layer application (wrapper-side ops are only: pad + free row-major reshapes)
# ---------------------------------------------------------------------------
def _apply_enc_layer(x_nhwc, layer, out_dtype):
    wb, b_row, m = layer
    B, H, W, Cin = x_nhwc.shape
    assert (H, W, Cin) == (m["H"], m["W"], m["Cin"])
    xp = jnp.pad(x_nhwc.astype(jnp.bfloat16), ((0, 0), (1, 1), (1, 1), (0, 0)))
    xflat = xp.reshape(B, (H + 2) // 2, 2 * (W + 2) * Cin)    # row-pair view (free)
    out = _band_matmul_selu(xflat, wb, b_row,
                            rows=m["rows"], n_off=m["n_off"], out_dtype=out_dtype)
    return out.reshape(B, m["Ho"], m["Wo"], m["Cout"])        # free reshape


def _apply_dec_layer(x_nhwc, layer, out_dtype):
    wb, b_row, m = layer
    B, H, W, Cin = x_nhwc.shape
    assert (H, W, Cin) == (m["H"], m["W"], m["Cin"])
    xp = jnp.pad(x_nhwc.astype(jnp.bfloat16), ((0, 0), (1, 1), (1, 1), (0, 0)))
    xflat = xp.reshape(B, H + 2, (W + 2) * Cin)
    out = _band_matmul_selu(xflat, wb, b_row,
                            rows=m["rows"], n_off=m["n_off"], out_dtype=out_dtype)
    # (B, H, 2*(2W)*Cout) row-major == (B, 2H, 2W, Cout): pixel shuffle for free.
    return out.reshape(B, m["Hout"], m["Wout"], m["Cout"])


# ---------------------------------------------------------------------------
# AutoEncoder parameters + forward
# ---------------------------------------------------------------------------
def init_params(key, img_size, num_patches, dim):
    scale = int(math.log2(img_size / num_patches))
    keys = iter(jax.random.split(key, 4 * (2 * scale)))
    enc, dec = [], []
    for _ in range(scale - 1):
        enc.append((0.1 * jax.random.normal(next(keys), (3, 3, 3, 3), jnp.float32),
                    0.1 * jax.random.normal(next(keys), (3,), jnp.float32)))
    enc.append((0.1 * jax.random.normal(next(keys), (dim, 3, 3, 3), jnp.float32),
                0.1 * jax.random.normal(next(keys), (dim,), jnp.float32)))
    dec.append((0.1 * jax.random.normal(next(keys), (dim, 3, 4, 4), jnp.float32),
                0.1 * jax.random.normal(next(keys), (3,), jnp.float32)))
    for _ in range(scale - 1):
        dec.append((0.1 * jax.random.normal(next(keys), (3, 3, 4, 4), jnp.float32),
                    0.1 * jax.random.normal(next(keys), (3,), jnp.float32)))
    return {"enc": enc, "dec": dec}


def autoencoder_forward(prepared, x_nchw, dim, has_cls_token, cls_key):
    x = jnp.transpose(x_nchw, (0, 2, 3, 1)).astype(jnp.bfloat16)   # NCHW -> NHWC
    for layer in prepared["enc"]:
        x = _apply_enc_layer(x, layer, jnp.bfloat16)               # bf16 intermediates
    z = x                                                          # (B, p, p, dim) bf16
    B, hp, wp, _ = z.shape

    # z.view(B, dim, -1).permute(0, 2, 1)  ==  NHWC reshape (row-major over h,w)
    z_seq = z.reshape(B, hp * wp, dim).astype(jnp.float32)
    if has_cls_token:
        # TODO(synk): torch draws the cls token from the global RNG at forward time;
        # a fixed jax PRNG key is used here for determinism.
        cls = 1e-6 * jax.random.normal(cls_key, (B, 1, dim), jnp.float32)
        z_seq = jnp.concatenate([cls, z_seq], axis=1)

    y = z
    n_dec = len(prepared["dec"])
    for i, layer in enumerate(prepared["dec"]):
        out_dtype = jnp.float32 if i == n_dec - 1 else jnp.bfloat16
        y = _apply_dec_layer(y, layer, out_dtype)
    x_rec = jnp.transpose(y, (0, 3, 1, 2))                         # NHWC -> NCHW
    return z_seq, x_rec


# ---------------------------------------------------------------------------
# Pure-JAX reference (lax convs) for a correctness sanity check.
# Activations are rounded to bf16 between layers to mirror the kernel path.
# ---------------------------------------------------------------------------
def _selu(x):
    return _SELU_SCALE * jnp.where(
        x > 0, x, _SELU_ALPHA * (jnp.exp(jnp.minimum(x, 0.0)) - 1.0))


def _ref_forward(params, x_nchw):
    x = x_nchw.astype(jnp.bfloat16)
    for (w, b) in params["enc"]:
        y = lax.conv_general_dilated(
            x, w.astype(jnp.bfloat16), (2, 2), [(1, 1), (1, 1)],
            dimension_numbers=("NCHW", "OIHW", "NCHW"),
            preferred_element_type=jnp.float32)
        x = _selu(y + b[None, :, None, None]).astype(jnp.bfloat16)
    z = x
    y = z
    n_dec = len(params["dec"])
    for i, (w, b) in enumerate(params["dec"]):
        w_conv = jnp.transpose(w[:, :, ::-1, ::-1], (1, 0, 2, 3))
        yy = lax.conv_general_dilated(
            y, w_conv.astype(jnp.bfloat16), (1, 1), [(2, 2), (2, 2)],
            lhs_dilation=(2, 2),
            dimension_numbers=("NCHW", "OIHW", "NCHW"),
            preferred_element_type=jnp.float32)
        y = _selu(yy + b[None, :, None, None])
        if i != n_dec - 1:
            y = y.astype(jnp.bfloat16)
    return z, y


if __name__ == "__main__":
    img_size, num_patches, dim, has_cls_token = 16, 4, 8, True
    B = 2

    key = jax.random.PRNGKey(0)
    k_param, k_x, k_cls = jax.random.split(key, 3)

    params = init_params(k_param, img_size, num_patches, dim)
    prepared = prepare_params(params, img_size)    # one-time band-weight build
    x = jax.random.normal(k_x, (B, 3, img_size, img_size), jnp.float32)

    # prepared (arrays + static ints) is closed over, not passed as a traced arg.
    fwd = jax.jit(lambda xx: autoencoder_forward(prepared, xx, dim, has_cls_token, k_cls))
    z_seq, x_rec = fwd(x)
    jax.block_until_ready((z_seq, x_rec))

    assert z_seq.shape == (B, num_patches * num_patches + 1, dim), z_seq.shape
    assert x_rec.shape == (B, 3, img_size, img_size), x_rec.shape
    assert np.isfinite(np.asarray(z_seq)).all() and np.isfinite(np.asarray(x_rec)).all()

    # sanity check against pure-JAX lax.conv reference (bf16 operands, f32 accum)
    z_ref, x_ref = _ref_forward(params, x)
    z_seq_body = np.asarray(z_seq[:, 1:, :])                 # drop cls token
    z_ref_seq = np.asarray(
        jnp.transpose(z_ref.astype(jnp.float32).reshape(B, dim, -1), (0, 2, 1)))
    if not np.allclose(z_seq_body, z_ref_seq, rtol=2e-2, atol=2e-2):
        raise AssertionError("encoder mismatch vs reference")
    if not np.allclose(np.asarray(x_rec), np.asarray(x_ref), rtol=2e-2, atol=2e-2):
        raise AssertionError("decoder mismatch vs reference")

    print("KERNEL_OK")
</pallas_src>

<mosaic_0001>
module attributes {stable_mosaic.version = 11 : i64} {
  func.func @_band_conv_selu_kernel(%arg0: i32, %arg1: memref<1x6x48xbf16, #tpu.memory_space<vmem>>, %arg2: memref<3x48x48xbf16, #tpu.memory_space<vmem>>, %arg3: memref<1x48xf32, #tpu.memory_space<vmem>>, %arg4: memref<1x4x48xbf16, #tpu.memory_space<vmem>>) attributes {dimension_semantics = [#tpu.dimension_semantics<parallel>], iteration_bounds = array<i64: 2>, scalar_prefetch = 0 : i64, scratch_operands = 0 : i64, tpu.core_type = #tpu.core_type<tc>, window_params = [{transform_indices = @transform_0, window_bounds = array<i64: 1, 6, 48>}, {pipeline_mode = #tpu.pipeline_mode<synchronous>, transform_indices = @transform_1, window_bounds = array<i64: 3, 48, 48>}, {pipeline_mode = #tpu.pipeline_mode<synchronous>, transform_indices = @transform_2, window_bounds = array<i64: 1, 48>}, {transform_indices = @transform_3, window_bounds = array<i64: 1, 4, 48>}]} {
    %c0 = arith.constant 0 : index
    %c0_0 = arith.constant 0 : index
    %c0_1 = arith.constant 0 : index
    %0 = vector.load %arg1[%c0, %c0_0, %c0_1] : memref<1x6x48xbf16, #tpu.memory_space<vmem>>, vector<1x6x48xbf16>
    %1 = vector.shape_cast %0 : vector<1x6x48xbf16> to vector<6x48xbf16>
    %2 = vector.extract_strided_slice %1 {offsets = [0, 0], sizes = [4, 48], strides = [1, 1]} : vector<6x48xbf16> to vector<4x48xbf16>
    %c0_2 = arith.constant 0 : index
    %c0_3 = arith.constant 0 : index
    %c0_4 = arith.constant 0 : index
    %3 = vector.load %arg2[%c0_2, %c0_3, %c0_4] : memref<3x48x48xbf16, #tpu.memory_space<vmem>>, vector<1x48x48xbf16>
    %4 = vector.shape_cast %3 : vector<1x48x48xbf16> to vector<48x48xbf16>
    %cst = arith.constant dense<0.000000e+00> : vector<4x48xf32>
    %5 = tpu.matmul %2, %4, %cst {dimension_numbers = #tpu.dot_dimension_numbers<[1], [0], [0], [1], [0, 0, 1, 1], [], []>} : vector<4x48xbf16>, vector<48x48xbf16>, vector<4x48xf32> -> vector<4x48xf32>
    %6 = vector.extract_strided_slice %1 {offsets = [1, 0], sizes = [4, 48], strides = [1, 1]} : vector<6x48xbf16> to vector<4x48xbf16>
    %c1 = arith.constant 1 : index
    %c0_5 = arith.constant 0 : index
    %c0_6 = arith.constant 0 : index
    %7 = vector.load %arg2[%c1, %c0_5, %c0_6] : memref<3x48x48xbf16, #tpu.memory_space<vmem>>, vector<1x48x48xbf16>
    %8 = vector.shape_cast %7 : vector<1x48x48xbf16> to vector<48x48xbf16>
    %cst_7 = arith.constant dense<0.000000e+00> : vector<4x48xf32>
    %9 = tpu.matmul %6, %8, %cst_7 {dimension_numbers = #tpu.dot_dimension_numbers<[1], [0], [0], [1], [0, 0, 1, 1], [], []>} : vector<4x48xbf16>, vector<48x48xbf16>, vector<4x48xf32> -> vector<4x48xf32>
    %10 = arith.addf %5, %9 : vector<4x48xf32>
    %11 = vector.extract_strided_slice %1 {offsets = [2, 0], sizes = [4, 48], strides = [1, 1]} : vector<6x48xbf16> to vector<4x48xbf16>
    %c2 = arith.constant 2 : index
    %c0_8 = arith.constant 0 : index
    %c0_9 = arith.constant 0 : index
    %12 = vector.load %arg2[%c2, %c0_8, %c0_9] : memref<3x48x48xbf16, #tpu.memory_space<vmem>>, vector<1x48x48xbf16>
    %13 = vector.shape_cast %12 : vector<1x48x48xbf16> to vector<48x48xbf16>
    %cst_10 = arith.constant dense<0.000000e+00> : vector<4x48xf32>
    %14 = tpu.matmul %11, %13, %cst_10 {dimension_numbers = #tpu.dot_dimension_numbers<[1], [0], [0], [1], [0, 0, 1, 1], [], []>} : vector<4x48xbf16>, vector<48x48xbf16>, vector<4x48xf32> -> vector<4x48xf32>
    %15 = arith.addf %10, %14 : vector<4x48xf32>
    %c0_11 = arith.constant 0 : index
    %c0_12 = arith.constant 0 : index
    %16 = vector.load %arg3[%c0_11, %c0_12] : memref<1x48xf32, #tpu.memory_space<vmem>>, vector<1x48xf32>
    %17 = vector.broadcast %16 : vector<1x48xf32> to vector<4x48xf32>
    %18 = arith.addf %15, %17 : vector<4x48xf32>
    %cst_13 = arith.constant 0.000000e+00 : f32
    %19 = vector.broadcast %cst_13 : f32 to vector<4x48xf32>
    %20 = arith.minimumf %18, %19 : vector<4x48xf32>
    %21 = math.exp %20 : vector<4x48xf32>
    %cst_14 = arith.constant 1.000000e+00 : f32
    %22 = vector.broadcast %cst_14 : f32 to vector<4x48xf32>
    %23 = arith.subf %21, %22 : vector<4x48xf32>
    %cst_15 = arith.constant 1.67326319 : f32
    %24 = vector.broadcast %cst_15 : f32 to vector<4x48xf32>
    %25 = arith.mulf %24, %23 : vector<4x48xf32>
    %cst_16 = arith.constant 0.000000e+00 : f32
    %26 = vector.broadcast %cst_16 : f32 to vector<4x48xf32>
    %27 = arith.cmpf ogt, %18, %26 : vector<4x48xf32>
    %28 = arith.select %27, %18, %25 : vector<4x48xi1>, vector<4x48xf32>
    %cst_17 = arith.constant 1.05070102 : f32
    %29 = vector.broadcast %cst_17 : f32 to vector<4x48xf32>
    %30 = arith.mulf %29, %28 : vector<4x48xf32>
    %31 = arith.truncf %30 : vector<4x48xf32> to vector<4x48xbf16>
    %c0_18 = arith.constant 0 : index
    %c0_19 = arith.constant 0 : index
    %c0_20 = arith.constant 0 : index
    %32 = vector.load %arg4[%c0_18, %c0_19, %c0_20] : memref<1x4x48xbf16, #tpu.memory_space<vmem>>, vector<1x4x48xbf16>
    %33 = vector.shape_cast %32 : vector<1x4x48xbf16> to vector<4x48xbf16>
    %34 = vector.shape_cast %31 : vector<4x48xbf16> to vector<1x4x48xbf16>
    tpu.vector_store %arg4[%c0_18, %c0_19, %c0_20], %34 {strides = array<i32>} : memref<1x4x48xbf16, #tpu.memory_space<vmem>>, vector<1x4x48xbf16>,
    return
  }
  func.func @transform_0(%arg0: i32) -> (i32, i32, i32) {
    %c0_i32 = arith.constant 0 : i32
    %c0_i32_0 = arith.constant 0 : i32
    %c0_i32_1 = arith.constant 0 : i32
    return %arg0, %c0_i32, %c0_i32_0 : i32, i32, i32
  }
  func.func @transform_1(%arg0: i32) -> (i32, i32, i32) {
    %c0_i32 = arith.constant 0 : i32
    %c0_i32_0 = arith.constant 0 : i32
    %c0_i32_1 = arith.constant 0 : i32
    %c0_i32_2 = arith.constant 0 : i32
    return %c0_i32, %c0_i32_0, %c0_i32_1 : i32, i32, i32
  }
  func.func @transform_2(%arg0: i32) -> (i32, i32) {
    %c0_i32 = arith.constant 0 : i32
    %c0_i32_0 = arith.constant 0 : i32
    %c0_i32_1 = arith.constant 0 : i32
    return %c0_i32, %c0_i32_0 : i32, i32
  }
  func.func @transform_3(%arg0: i32) -> (i32, i32, i32) {
    %c0_i32 = arith.constant 0 : i32
    %c0_i32_0 = arith.constant 0 : i32
    %c0_i32_1 = arith.constant 0 : i32
    return %arg0, %c0_i32, %c0_i32_0 : i32, i32, i32
  }
}

module attributes {stable_mosaic.version = 11 : i64} {
  func.func @_band_conv_selu_kernel(%arg0: i32, %arg1: memref<1x5x60xbf16, #tpu.memory_space<vmem>>, %arg2: memref<2x60x32xbf16, #tpu.memory_space<vmem>>, %arg3: memref<1x32xf32, #tpu.memory_space<vmem>>, %arg4: memref<1x4x32xbf16, #tpu.memory_space<vmem>>) attributes {dimension_semantics = [#tpu.dimension_semantics<parallel>], iteration_bounds = array<i64: 2>, scalar_prefetch = 0 : i64, scratch_operands = 0 : i64, tpu.core_type = #tpu.core_type<tc>, window_params = [{transform_indices = @transform_0, window_bounds = array<i64: 1, 5, 60>}, {pipeline_mode = #tpu.pipeline_mode<synchronous>, transform_indices = @transform_1, window_bounds = array<i64: 2, 60, 32>}, {pipeline_mode = #tpu.pipeline_mode<synchronous>, transform_indices = @transform_2, window_bounds = array<i64: 1, 32>}, {transform_indices = @transform_3, window_bounds = array<i64: 1, 4, 32>}]} {
    %c0 = arith.constant 0 : index
    %c0_0 = arith.constant 0 : index
    %c0_1 = arith.constant 0 : index
    %0 = vector.load %arg1[%c0, %c0_0, %c0_1] : memref<1x5x60xbf16, #tpu.memory_space<vmem>>, vector<1x5x60xbf16>
    %1 = vector.shape_cast %0 : vector<1x5x60xbf16> to vector<5x60xbf16>
    %2 = vector.extract_strided_slice %1 {offsets = [0, 0], sizes = [4, 60], strides = [1, 1]} : vector<5x60xbf16> to vector<4x60xbf16>
    %c0_2 = arith.constant 0 : index
    %c0_3 = arith.constant 0 : index
    %c0_4 = arith.constant 0 : index
    %3 = vector.load %arg2[%c0_2, %c0_3, %c0_4] : memref<2x60x32xbf16, #tpu.memory_space<vmem>>, vector<1x60x32xbf16>
    %4 = vector.shape_cast %3 : vector<1x60x32xbf16> to vector<60x32xbf16>
    %cst = arith.constant dense<0.000000e+00> : vector<4x32xf32>
    %5 = tpu.matmul %2, %4, %cst {dimension_numbers = #tpu.dot_dimension_numbers<[1], [0], [0], [1], [0, 0, 1, 1], [], []>} : vector<4x60xbf16>, vector<60x32xbf16>, vector<4x32xf32> -> vector<4x32xf32>
    %6 = vector.extract_strided_slice %1 {offsets = [1, 0], sizes = [4, 60], strides = [1, 1]} : vector<5x60xbf16> to vector<4x60xbf16>
    %c1 = arith.constant 1 : index
    %c0_5 = arith.constant 0 : index
    %c0_6 = arith.constant 0 : index
    %7 = vector.load %arg2[%c1, %c0_5, %c0_6] : memref<2x60x32xbf16, #tpu.memory_space<vmem>>, vector<1x60x32xbf16>
    %8 = vector.shape_cast %7 : vector<1x60x32xbf16> to vector<60x32xbf16>
    %cst_7 = arith.constant dense<0.000000e+00> : vector<4x32xf32>
    %9 = tpu.matmul %6, %8, %cst_7 {dimension_numbers = #tpu.dot_dimension_numbers<[1], [0], [0], [1], [0, 0, 1, 1], [], []>} : vector<4x60xbf16>, vector<60x32xbf16>, vector<4x32xf32> -> vector<4x32xf32>
    %10 = arith.addf %5, %9 : vector<4x32xf32>
    %c0_8 = arith.constant 0 : index
    %c0_9 = arith.constant 0 : index
    %11 = vector.load %arg3[%c0_8, %c0_9] : memref<1x32xf32, #tpu.memory_space<vmem>>, vector<1x32xf32>
    %12 = vector.broadcast %11 : vector<1x32xf32> to vector<4x32xf32>
    %13 = arith.addf %10, %12 : vector<4x32xf32>
    %cst_10 = arith.constant 0.000000e+00 : f32
    %14 = vector.broadcast %cst_10 : f32 to vector<4x32xf32>
    %15 = arith.minimumf %13, %14 : vector<4x32xf32>
    %16 = math.exp %15 : vector<4x32xf32>
    %cst_11 = arith.constant 1.000000e+00 : f32
    %17 = vector.broadcast %cst_11 : f32 to vector<4x32xf32>
    %18 = arith.subf %16, %17 : vector<4x32xf32>
    %cst_12 = arith.constant 1.67326319 : f32
    %19 = vector.broadcast %cst_12 : f32 to vector<4x32xf32>
    %20 = arith.mulf %19, %18 : vector<4x32xf32>
    %cst_13 = arith.constant 0.000000e+00 : f32
    %21 = vector.broadcast %cst_13 : f32 to vector<4x32xf32>
    %22 = arith.cmpf ogt, %13, %21 : vector<4x32xf32>
    %23 = arith.select %22, %13, %20 : vector<4x32xi1>, vector<4x32xf32>
    %cst_14 = arith.constant 1.05070102 : f32
    %24 = vector.broadcast %cst_14 : f32 to vector<4x32xf32>
    %25 = arith.mulf %24, %23 : vector<4x32xf32>
    %26 = arith.truncf %25 : vector<4x32xf32> to vector<4x32xbf16>
    %c0_15 = arith.constant 0 : index
    %c0_16 = arith.constant 0 : index
    %c0_17 = arith.constant 0 : index
    %27 = vector.load %arg4[%c0_15, %c0_16, %c0_17] : memref<1x4x32xbf16, #tpu.memory_space<vmem>>, vector<1x4x32xbf16>
    %28 = vector.shape_cast %27 : vector<1x4x32xbf16> to vector<4x32xbf16>
    %29 = vector.shape_cast %26 : vector<4x32xbf16> to vector<1x4x32xbf16>
    tpu.vector_store %arg4[%c0_15, %c0_16, %c0_17], %29 {strides = array<i32>} : memref<1x4x32xbf16, #tpu.memory_space<vmem>>, vector<1x4x32xbf16>,
    return
  }
  func.func @transform_0(%arg0: i32) -> (i32, i32, i32) {
    %c0_i32 = arith.constant 0 : i32
    %c0_i32_0 = arith.constant 0 : i32
    %c0_i32_1 = arith.constant 0 : i32
    return %arg0, %c0_i32, %c0_i32_0 : i32, i32, i32
  }
  func.func @transform_1(%arg0: i32) -> (i32, i32, i32) {
    %c0_i32 = arith.constant 0 : i32
    %c0_i32_0 = arith.constant 0 : i32
    %c0_i32_1 = arith.constant 0 : i32
    %c0_i32_2 = arith.constant 0 : i32
    return %c0_i32, %c0_i32_0, %c0_i32_1 : i32, i32, i32
  }
  func.func @transform_2(%arg0: i32) -> (i32, i32) {
    %c0_i32 = arith.constant 0 : i32
    %c0_i32_0 = arith.constant 0 : i32
    %c0_i32_1 = arith.constant 0 : i32
    return %c0_i32, %c0_i32_0 : i32, i32
  }
  func.func @transform_3(%arg0: i32) -> (i32, i32, i32) {
    %c0_i32 = arith.constant 0 : i32
    %c0_i32_0 = arith.constant 0 : i32
    %c0_i32_1 = arith.constant 0 : i32
    return %arg0, %c0_i32, %c0_i32_0 : i32, i32, i32
  }
}

module attributes {stable_mosaic.version = 11 : i64} {
  func.func @_band_conv_selu_kernel(%arg0: i32, %arg1: memref<1x9x108xbf16, #tpu.memory_space<vmem>>, %arg2: memref<2x108x24xbf16, #tpu.memory_space<vmem>>, %arg3: memref<1x24xf32, #tpu.memory_space<vmem>>, %arg4: memref<1x8x24xbf16, #tpu.memory_space<vmem>>) attributes {dimension_semantics = [#tpu.dimension_semantics<parallel>], iteration_bounds = array<i64: 2>, scalar_prefetch = 0 : i64, scratch_operands = 0 : i64, tpu.core_type = #tpu.core_type<tc>, window_params = [{transform_indices = @transform_0, window_bounds = array<i64: 1, 9, 108>}, {pipeline_mode = #tpu.pipeline_mode<synchronous>, transform_indices = @transform_1, window_bounds = array<i64: 2, 108, 24>}, {pipeline_mode = #tpu.pipeline_mode<synchronous>, transform_indices = @transform_2, window_bounds = array<i64: 1, 24>}, {transform_indices = @transform_3, window_bounds = array<i64: 1, 8, 24>}]} {
    %c0 = arith.constant 0 : index
    %c0_0 = arith.constant 0 : index
    %c0_1 = arith.constant 0 : index
    %0 = vector.load %arg1[%c0, %c0_0, %c0_1] : memref<1x9x108xbf16, #tpu.memory_space<vmem>>, vector<1x9x108xbf16>
    %1 = vector.shape_cast %0 : vector<1x9x108xbf16> to vector<9x108xbf16>
    %2 = vector.extract_strided_slice %1 {offsets = [0, 0], sizes = [8, 108], strides = [1, 1]} : vector<9x108xbf16> to vector<8x108xbf16>
    %c0_2 = arith.constant 0 : index
    %c0_3 = arith.constant 0 : index
    %c0_4 = arith.constant 0 : index
    %3 = vector.load %arg2[%c0_2, %c0_3, %c0_4] : memref<2x108x24xbf16, #tpu.memory_space<vmem>>, vector<1x108x24xbf16>
    %4 = vector.shape_cast %3 : vector<1x108x24xbf16> to vector<108x24xbf16>
    %cst = arith.constant dense<0.000000e+00> : vector<8x24xf32>
    %5 = tpu.matmul %2, %4, %cst {dimension_numbers = #tpu.dot_dimension_numbers<[1], [0], [0], [1], [0, 0, 1, 1], [], []>} : vector<8x108xbf16>, vector<108x24xbf16>, vector<8x24xf32> -> vector<8x24xf32>
    %6 = vector.extract_strided_slice %1 {offsets = [1, 0], sizes = [8, 108], strides = [1, 1]} : vector<9x108xbf16> to vector<8x108xbf16>
    %c1 = arith.constant 1 : index
    %c0_5 = arith.constant 0 : index
    %c0_6 = arith.constant 0 : index
    %7 = vector.load %arg2[%c1, %c0_5, %c0_6] : memref<2x108x24xbf16, #tpu.memory_space<vmem>>, vector<1x108x24xbf16>
    %8 = vector.shape_cast %7 : vector<1x108x24xbf16> to vector<108x24xbf16>
    %cst_7 = arith.constant dense<0.000000e+00> : vector<8x24xf32>
    %9 = tpu.matmul %6, %8, %cst_7 {dimension_numbers = #tpu.dot_dimension_numbers<[1], [0], [0], [1], [0, 0, 1, 1], [], []>} : vector<8x108xbf16>, vector<108x24xbf16>, vector<8x24xf32> -> vector<8x24xf32>
    %10 = arith.addf %5, %9 : vector<8x24xf32>
    %c0_8 = arith.constant 0 : index
    %c0_9 = arith.constant 0 : index
    %11 = vector.load %arg3[%c0_8, %c0_9] : memref<1x24xf32, #tpu.memory_space<vmem>>, vector<1x24xf32>
    %12 = vector.broadcast %11 : vector<1x24xf32> to vector<8x24xf32>
    %13 = arith.addf %10, %12 : vector<8x24xf32>
    %cst_10 = arith.constant 0.000000e+00 : f32
    %14 = vector.broadcast %cst_10 : f32 to vector<8x24xf32>
    %15 = arith.minimumf %13, %14 : vector<8x24xf32>
    %16 = math.exp %15 : vector<8x24xf32>
    %cst_11 = arith.constant 1.000000e+00 : f32
    %17 = vector.broadcast %cst_11 : f32 to vector<8x24xf32>
    %18 = arith.subf %16, %17 : vector<8x24xf32>
    %cst_12 = arith.constant 1.67326319 : f32
    %19 = vector.broadcast %cst_12 : f32 to vector<8x24xf32>
    %20 = arith.mulf %19, %18 : vector<8x24xf32>
    %cst_13 = arith.constant 0.000000e+00 : f32
    %21 = vector.broadcast %cst_13 : f32 to vector<8x24xf32>
    %22 = arith.cmpf ogt, %13, %21 : vector<8x24xf32>
    %23 = arith.select %22, %13, %20 : vector<8x24xi1>, vector<8x24xf32>
    %cst_14 = arith.constant 1.05070102 : f32
    %24 = vector.broadcast %cst_14 : f32 to vector<8x24xf32>
    %25 = arith.mulf %24, %23 : vector<8x24xf32>
    %26 = arith.truncf %25 : vector<8x24xf32> to vector<8x24xbf16>
    %c0_15 = arith.constant 0 : index
    %c0_16 = arith.constant 0 : index
    %c0_17 = arith.constant 0 : index
    %27 = vector.load %arg4[%c0_15, %c0_16, %c0_17] : memref<1x8x24xbf16, #tpu.memory_space<vmem>>, vector<1x8x24xbf16>
    %28 = vector.shape_cast %27 : vector<1x8x24xbf16> to vector<8x24xbf16>
    %29 = vector.shape_cast %26 : vector<8x24xbf16> to vector<1x8x24xbf16>
    tpu.vector_store %arg4[%c0_15, %c0_16, %c0_17], %29 {strides = array<i32>} : memref<1x8x24xbf16, #tpu.memory_space<vmem>>, vector<1x8x24xbf16>,
    return
  }
  func.func @transform_0(%arg0: i32) -> (i32, i32, i32) {
    %c0_i32 = arith.constant 0 : i32
    %c0_i32_0 = arith.constant 0 : i32
    %c0_i32_1 = arith.constant 0 : i32
    return %arg0, %c0_i32, %c0_i32_0 : i32, i32, i32
  }
  func.func @transform_1(%arg0: i32) -> (i32, i32, i32) {
    %c0_i32 = arith.constant 0 : i32
    %c0_i32_0 = arith.constant 0 : i32
    %c0_i32_1 = arith.constant 0 : i32
    %c0_i32_2 = arith.constant 0 : i32
    return %c0_i32, %c0_i32_0, %c0_i32_1 : i32, i32, i32
  }
  func.func @transform_2(%arg0: i32) -> (i32, i32) {
    %c0_i32 = arith.constant 0 : i32
    %c0_i32_0 = arith.constant 0 : i32
    %c0_i32_1 = arith.constant 0 : i32
    return %c0_i32, %c0_i32_0 : i32, i32
  }
  func.func @transform_3(%arg0: i32) -> (i32, i32, i32) {
    %c0_i32 = arith.constant 0 : i32
    %c0_i32_0 = arith.constant 0 : i32
    %c0_i32_1 = arith.constant 0 : i32
    return %arg0, %c0_i32, %c0_i32_0 : i32, i32, i32
  }
}

module attributes {stable_mosaic.version = 11 : i64} {
  func.func @_band_conv_selu_kernel(%arg0: i32, %arg1: memref<1x10x30xbf16, #tpu.memory_space<vmem>>, %arg2: memref<3x30x96xbf16, #tpu.memory_space<vmem>>, %arg3: memref<1x96xf32, #tpu.memory_space<vmem>>, %arg4: memref<1x8x96xf32, #tpu.memory_space<vmem>>) attributes {dimension_semantics = [#tpu.dimension_semantics<parallel>], iteration_bounds = array<i64: 2>, scalar_prefetch = 0 : i64, scratch_operands = 0 : i64, tpu.core_type = #tpu.core_type<tc>, window_params = [{transform_indices = @transform_0, window_bounds = array<i64: 1, 10, 30>}, {pipeline_mode = #tpu.pipeline_mode<synchronous>, transform_indices = @transform_1, window_bounds = array<i64: 3, 30, 96>}, {pipeline_mode = #tpu.pipeline_mode<synchronous>, transform_indices = @transform_2, window_bounds = array<i64: 1, 96>}, {transform_indices = @transform_3, window_bounds = array<i64: 1, 8, 96>}]} {
    %c0 = arith.constant 0 : index
    %c0_0 = arith.constant 0 : index
    %c0_1 = arith.constant 0 : index
    %0 = vector.load %arg1[%c0, %c0_0, %c0_1] : memref<1x10x30xbf16, #tpu.memory_space<vmem>>, vector<1x10x30xbf16>
    %1 = vector.shape_cast %0 : vector<1x10x30xbf16> to vector<10x30xbf16>
    %2 = vector.extract_strided_slice %1 {offsets = [0, 0], sizes = [8, 30], strides = [1, 1]} : vector<10x30xbf16> to vector<8x30xbf16>
    %c0_2 = arith.constant 0 : index
    %c0_3 = arith.constant 0 : index
    %c0_4 = arith.constant 0 : index
    %3 = vector.load %arg2[%c0_2, %c0_3, %c0_4] : memref<3x30x96xbf16, #tpu.memory_space<vmem>>, vector<1x30x96xbf16>
    %4 = vector.shape_cast %3 : vector<1x30x96xbf16> to vector<30x96xbf16>
    %cst = arith.constant dense<0.000000e+00> : vector<8x96xf32>
    %5 = tpu.matmul %2, %4, %cst {dimension_numbers = #tpu.dot_dimension_numbers<[1], [0], [0], [1], [0, 0, 1, 1], [], []>} : vector<8x30xbf16>, vector<30x96xbf16>, vector<8x96xf32> -> vector<8x96xf32>
    %6 = vector.extract_strided_slice %1 {offsets = [1, 0], sizes = [8, 30], strides = [1, 1]} : vector<10x30xbf16> to vector<8x30xbf16>
    %c1 = arith.constant 1 : index
    %c0_5 = arith.constant 0 : index
    %c0_6 = arith.constant 0 : index
    %7 = vector.load %arg2[%c1, %c0_5, %c0_6] : memref<3x30x96xbf16, #tpu.memory_space<vmem>>, vector<1x30x96xbf16>
    %8 = vector.shape_cast %7 : vector<1x30x96xbf16> to vector<30x96xbf16>
    %cst_7 = arith.constant dense<0.000000e+00> : vector<8x96xf32>
    %9 = tpu.matmul %6, %8, %cst_7 {dimension_numbers = #tpu.dot_dimension_numbers<[1], [0], [0], [1], [0, 0, 1, 1], [], []>} : vector<8x30xbf16>, vector<30x96xbf16>, vector<8x96xf32> -> vector<8x96xf32>
    %10 = arith.addf %5, %9 : vector<8x96xf32>
    %11 = vector.extract_strided_slice %1 {offsets = [2, 0], sizes = [8, 30], strides = [1, 1]} : vector<10x30xbf16> to vector<8x30xbf16>
    %c2 = arith.constant 2 : index
    %c0_8 = arith.constant 0 : index
    %c0_9 = arith.constant 0 : index
    %12 = vector.load %arg2[%c2, %c0_8, %c0_9] : memref<3x30x96xbf16, #tpu.memory_space<vmem>>, vector<1x30x96xbf16>
    %13 = vector.shape_cast %12 : vector<1x30x96xbf16> to vector<30x96xbf16>
    %cst_10 = arith.constant dense<0.000000e+00> : vector<8x96xf32>
    %14 = tpu.matmul %11, %13, %cst_10 {dimension_numbers = #tpu.dot_dimension_numbers<[1], [0], [0], [1], [0, 0, 1, 1], [], []>} : vector<8x30xbf16>, vector<30x96xbf16>, vector<8x96xf32> -> vector<8x96xf32>
    %15 = arith.addf %10, %14 : vector<8x96xf32>
    %c0_11 = arith.constant 0 : index
    %c0_12 = arith.constant 0 : index
    %16 = vector.load %arg3[%c0_11, %c0_12] : memref<1x96xf32, #tpu.memory_space<vmem>>, vector<1x96xf32>
    %17 = vector.broadcast %16 : vector<1x96xf32> to vector<8x96xf32>
    %18 = arith.addf %15, %17 : vector<8x96xf32>
    %cst_13 = arith.constant 0.000000e+00 : f32
    %19 = vector.broadcast %cst_13 : f32 to vector<8x96xf32>
    %20 = arith.minimumf %18, %19 : vector<8x96xf32>
    %21 = math.exp %20 : vector<8x96xf32>
    %cst_14 = arith.constant 1.000000e+00 : f32
    %22 = vector.broadcast %cst_14 : f32 to vector<8x96xf32>
    %23 = arith.subf %21, %22 : vector<8x96xf32>
    %cst_15 = arith.constant 1.67326319 : f32
    %24 = vector.broadcast %cst_15 : f32 to vector<8x96xf32>
    %25 = arith.mulf %24, %23 : vector<8x96xf32>
    %cst_16 = arith.constant 0.000000e+00 : f32
    %26 = vector.broadcast %cst_16 : f32 to vector<8x96xf32>
    %27 = arith.cmpf ogt, %18, %26 : vector<8x96xf32>
    %28 = arith.select %27, %18, %25 : vector<8x96xi1>, vector<8x96xf32>
    %cst_17 = arith.constant 1.05070102 : f32
    %29 = vector.broadcast %cst_17 : f32 to vector<8x96xf32>
    %30 = arith.mulf %29, %28 : vector<8x96xf32>
    %c0_18 = arith.constant 0 : index
    %c0_19 = arith.constant 0 : index
    %c0_20 = arith.constant 0 : index
    %31 = vector.load %arg4[%c0_18, %c0_19, %c0_20] : memref<1x8x96xf32, #tpu.memory_space<vmem>>, vector<1x8x96xf32>
    %32 = vector.shape_cast %31 : vector<1x8x96xf32> to vector<8x96xf32>
    %33 = vector.shape_cast %30 : vector<8x96xf32> to vector<1x8x96xf32>
    tpu.vector_store %arg4[%c0_18, %c0_19, %c0_20], %33 {strides = array<i32>} : memref<1x8x96xf32, #tpu.memory_space<vmem>>, vector<1x8x96xf32>,
    return
  }
  func.func @transform_0(%arg0: i32) -> (i32, i32, i32) {
    %c0_i32 = arith.constant 0 : i32
    %c0_i32_0 = arith.constant 0 : i32
    %c0_i32_1 = arith.constant 0 : i32
    return %arg0, %c0_i32, %c0_i32_0 : i32, i32, i32
  }
  func.func @transform_1(%arg0: i32) -> (i32, i32, i32) {
    %c0_i32 = arith.constant 0 : i32
    %c0_i32_0 = arith.constant 0 : i32
    %c0_i32_1 = arith.constant 0 : i32
    %c0_i32_2 = arith.constant 0 : i32
    return %c0_i32, %c0_i32_0, %c0_i32_1 : i32, i32, i32
  }
  func.func @transform_2(%arg0: i32) -> (i32, i32) {
    %c0_i32 = arith.constant 0 : i32
    %c0_i32_0 = arith.constant 0 : i32
    %c0_i32_1 = arith.constant 0 : i32
    return %c0_i32, %c0_i32_0 : i32, i32
  }
  func.func @transform_3(%arg0: i32) -> (i32, i32, i32) {
    %c0_i32 = arith.constant 0 : i32
    %c0_i32_0 = arith.constant 0 : i32
    %c0_i32_1 = arith.constant 0 : i32
    return %arg0, %c0_i32, %c0_i32_0 : i32, i32, i32
  }
}

</mosaic_0001>

<bundles_post_ra>
// kernel: _lambda_.6
= control target key start
LH: loop header
LB: loop body
LE: loop exit
PB: predicated region body
PF: predicated region fallthrough
CT: control target
= control target key end

     0   :  { %s586_s12 = smov 0   ;;  %s640_s0 = inlined_call_operand.vmem [shape: bf16[2,6,48], index: 0, kind: input, shape index: {}]   ;;  %s641_s1 = inlined_call_operand.vmem [shape: bf16[3,48,48], index: 1, kind: input, shape index: {}]   ;;  %s642_s2 = inlined_call_operand.vmem [shape: f32[1,48], index: 2, kind: input, shape index: {}]   ;;  %s643_s3 = inlined_call_operand.vmem [shape: bf16[2,4,48], index: 3, kind: output, shape index: {}]  }
   0x1 LB: > { %s456_s13 = sadd.s32 4294967295, %s562_s12   ;;  %p460_p0 = scmp.ge.s32.totalorder %s562_s12, 1  ;;  %s562_s12 = sphi %s586_s12, %s13_s12  }
   0x2   : > { %p136_p1 = scmp.lt.s32.totalorder %s562_s12, 3 }
   0x4   : > { %p137_p2 = pnand %p460_p0, %p136_p1 }
   0x5   : > { %v544_v0 = vld [vmem:[%s641_s1 + $0x18] sm:$0xff] (!%p137_p2)   ;;  %v564_v1 = vmov (!%p137_p2), 0.0   ;;  %v545_v2 = vld [vmem:[%s641_s1] sm:$0xff] (!%p137_p2)   ;;  %vm565_vm0 = vmmov (!%p137_p2), 0   ;;  %p158_p3 = scmp.lt.s32.totalorder (!%p137_p2), %s456_s13, 1  ;;  %v547_v4 = vld [vmem:[%s641_s1 + $0x8] sm:$0xff] (!%p137_p2)  }
   0x6   : > { %140 = sbr.rel (%p137_p2) target bundleno = 278 (0x116), region = 32  ;;  %504 = vmatprep.subr.bf16.mxu0 (!%p137_p2), %v564_v1  ;;  %514 = vmatprep.subr.bf16.mxu1 (!%p137_p2), %v564_v1  ;;  %v546_v3 = vld [vmem:[%s641_s1 + $0x20] sm:$0xff] (!%p137_p2)   ;;  %v548_v5 = vld [vmem:[%s641_s1 + $0x28] sm:$0xff] (!%p137_p2)   ;;  %v549_v6 = vld [vmem:[%s641_s1 + $0x10] sm:$0xff] (!%p137_p2)   ;;  %vm209_vm1 = vcmask (!%p137_p2), 392192   ;;  %vm401_vm3 = vcmask (!%p137_p2), 386048  }
   0x7   : > { %505 = vmatpush3.bf16.msra.mxu0 (!%p137_p2), %v544_v0  ;;  %510 = vmatprep.mubr.msk.bf16.mxu0 (!%p137_p2), %vm565_vm0, %v564_v1  ;;  %v551_v12 = vld [vmem:[%s641_s1 + $0x30] sm:$0xff] (!%p137_p2)   ;;  %v552_v14 = vld [vmem:[%s641_s1 + $0x38] sm:$0xff] (!%p137_p2)   ;;  %v553_v15 = vld [vmem:[%s641_s1 + $0x40] sm:$0xff] (!%p137_p2)  }
   0x8   : > { %515 = vmatpush3.bf16.msra.mxu1 (!%p137_p2), %v545_v2  ;;  %506 = vmatprep.subr.bf16.mxu0 (!%p137_p2), %v564_v1  ;;  %v488_v27 = vld [vmem:[%s642_s2] ss:$0 sm:$0xff] (!%p137_p2) }
   0x9   : > { %516 = vmatprep.subr.bf16.mxu1 (!%p137_p2), %v564_v1  ;;  %520 = vmatprep.mubr.msk.bf16.mxu1 (!%p137_p2), %vm565_vm0, %v564_v1 }
   0xb   : > { %507 = vmatpush3.bf16.msra.mxu0 (!%p137_p2), %v546_v3 }
   0xc   : > { %517 = vmatpush3.bf16.msra.mxu1 (!%p137_p2), %v547_v4  ;;  %508 = vmatprep.subr.bf16.mxu0 (!%p137_p2), %v564_v1 }
   0xd   : > { %s645_s13 = smov (!%p158_p3, %s456_s13), 1  ;;  %518 = vmatprep.subr.bf16.mxu1 %v564_v1 }
   0xe   : > { %s461_s24 = sshll.u32 %s645_s13, 2  ;;  %s462_s11 = sshll.u32 %s645_s13, 1 }
   0xf   : > { %s161_s29 = scalar_lea.vmem %s640_s0, %s461_s24  ;;  %509 = vmatpush3.bf16.msra.mxu0 %v548_v5  ;;  %s165_s16 = scalar_lea.vmem %s643_s3, %s462_s11 }
  0x10   : > { %v167_v7 = vld [vmem:[%s161_s29] sm:$0x7]  ;;  %519 = vmatpush3.bf16.msra.mxu1 %v549_v6  ;;  %524 = vmatprep.subr.bf16.mxu0 %v564_v1 }
  0x11   : > { %v469_v8 = vcombine.low %v167_v7, %v167_v7 }
  0x13   : > { %v185_v9 = vshrl.u32 %v469_v8, 16  ;;  %v187_v10 = vshll.u32 %v469_v8, 16  ;;  %521 = vmatmul.mubr.msk.bf16.vlgmr.msra.gmra.mrb[0].mxu1 %vm209_vm1, %v167_v7  ;;  %v321_v16 = vrot.slane %v469_v8, 1 }
  0x15   : > { %v189_v11 = vrot.slane %v187_v10, 1 }
  0x17   : > { %v190_v13 = vor.u32 %v189_v11, %v185_v9 }
  0x19   : > { %511 = vmatmul.mubr.msk.bf16.vlgmr.msra.gmra.mrb[0].mxu0 %vm209_vm1, %v190_v13 }
  0x1a   : > { %525 = vmatpush3.bf16.msra.mxu0 %v551_v12  ;;  %530 = vmatprep.mubr.msk.bf16.mxu0 %vm565_vm0, %v564_v1 }
  0x1b   : > { %526 = vmatprep.subr.bf16.mxu0 %v564_v1 }
  0x1e   : > { %527 = vmatpush3.bf16.msra.mxu0 %v552_v14 }
  0x1f   : > { %528 = vmatprep.subr.bf16.mxu0 %v564_v1 }
  0x22   : > { %529 = vmatpush3.bf16.msra.mxu0 %v553_v15 }
  0x25   : > { %531 = vmatmul.mubr.msk.bf16.vlgmr.msra.gmra.mrb[4].mxu0 %vm209_vm1, %v321_v16 }
  0xe6   : > { %v308_v17 = vpop.f32.mrb[0].mxu1 }
  0xe7   : > { %v522_v18 = vpop.f32.mrb[1].mxu1 }
  0xe8   : > { %v311_v19 = vpop.f32.mrb[2].mxu1 }
  0xe9   : > { %v523_v21 = vpop.f32.mrb[3].mxu1 }
  0xec   : > { %v247_v20 = vpop.f32.mrb[0].mxu0 }
  0xed   : > { %v309_v22 = vadd.f32 %v308_v17, %v247_v20  ;;  %v512_v23 = vpop.f32.mrb[1].mxu0 }
  0xee   : > { %v250_v24 = vpop.f32.mrb[2].mxu0 }
  0xef   : > { %v513_v25 = vpop.f32.mrb[3].mxu0 }
  0xf8   : > { %v377_v26 = vpop.f32.mrb[4].mxu0 }
  0xf9   : > { %v383_v28 = vadd.f32 %v377_v26, %v309_v22  ;;  %v532_v29 = vpop.f32.mrb[5].mxu0 }
  0xfa   : > { %v380_v30 = vpop.f32.mrb[6].mxu0 }
  0xfb   : > { %v391_v31 = vadd.f32 %v488_v27, %v383_v28  ;;  %v533_v32 = vpop.f32.mrb[7].mxu0 }
  0xfd   : > { %v392_v33 = vmin.f32 %v391_v31, 0.0  ;;  %vm397_vm2 = vcmp.gt.f32.partialorder %v391_v31, 0.0 }
  0xff   : > { %v393_v34 = vmul.f32 1.442695, %v392_v33 }
 0x101   : > { %554 = vpow2.f32 %v393_v34 }
 0x10b   : > { %v555_v35 = vpop.eup %554 }
 0x10c   : > { %v489_v36 = vadd.f32 -1.0, %v555_v35 }
 0x10e   : > { %v396_v37 = vmul.f32 1.6732632, %v489_v36 }
 0x110   : > { %v398_v38 = vsel %vm397_vm2, %v391_v31, %v396_v37 }
 0x111   : > { %v399_v39 = vmul.f32 1.050701, %v398_v38 }
 0x113   : > { %v400_v40 = vpack.c.bf16 %v399_v39, %v399_v39 }
 0x115   : > { %402 = vst.msk [vmem:[%s165_s16] sm:$0x3] %vm401_vm3, %v400_v40 }
 0x116 PF: > { %s13_s12 = sadd.s32 1, %s562_s12  }
 0x117   : > { %p10_p4 = scmp.ge.s32.totalorder %s13_s12, 4  }
 0x119   :  { %12 = sbr.rel (!%p10_p4) target bundleno = 1 (0x1), region = 64 }

// kernel: _lambda_.4
= control target key start
LH: loop header
LB: loop body
LE: loop exit
PB: predicated region body
PF: predicated region fallthrough
CT: control target
= control target key end

     0   :  { %s614_s12 = smov 0   ;;  %s680_s0 = inlined_call_operand.vmem [shape: bf16[2,9,108], index: 0, kind: input, shape index: {}]   ;;  %s681_s1 = inlined_call_operand.vmem [shape: bf16[2,108,24], index: 1, kind: input, shape index: {}]   ;;  %s682_s2 = inlined_call_operand.vmem [shape: f32[1,24], index: 2, kind: input, shape index: {}]   ;;  %s683_s3 = inlined_call_operand.vmem [shape: bf16[2,8,24], index: 3, kind: output, shape index: {}]  }
   0x1 LB: > { %s461_s13 = sadd.s32 4294967295, %s590_s12   ;;  %p465_p0 = scmp.ge.s32.totalorder %s590_s12, 1  ;;  %s590_s12 = sphi %s614_s12, %s13_s12  }
   0x2   : > { %p137_p1 = scmp.lt.s32.totalorder %s590_s12, 3 }
   0x4   : > { %p138_p2 = pnand %p465_p0, %p137_p1 }
   0x5   : > { %v567_v0 = vld [vmem:[%s681_s1 + $0x38] sm:$0xff] (!%p138_p2)   ;;  %v592_v1 = vmov (!%p138_p2), 0.0   ;;  %v568_v2 = vld [vmem:[%s681_s1] sm:$0xff] (!%p138_p2)   ;;  %v570_v4 = vld [vmem:[%s681_s1 + $0x8] sm:$0xff] (!%p138_p2)   ;;  %p160_p3 = scmp.lt.s32.totalorder (!%p138_p2), %s461_s13, 1  ;;  %vm593_vm0 = vmmov (!%p138_p2), 0  }
   0x6   : > { %141 = sbr.rel (%p138_p2) target bundleno = 275 (0x113), region = 32  ;;  %521 = vmatprep.subr.bf16.mxu0 (!%p138_p2), %v592_v1  ;;  %539 = vmatprep.subr.bf16.mxu1 (!%p138_p2), %v592_v1  ;;  %v569_v3 = vld [vmem:[%s681_s1 + $0x40] sm:$0xff] (!%p138_p2)   ;;  %v571_v5 = vld [vmem:[%s681_s1 + $0x48] sm:$0xff] (!%p138_p2)   ;;  %v572_v6 = vld [vmem:[%s681_s1 + $0x10] sm:$0xff] (!%p138_p2)   ;;  %vm258_vm1 = vcmask (!%p138_p2), 1045504   ;;  %vm254_vm2 = vcmask (!%p138_p2), 883712  }
   0x7   : > { %522 = vmatpush3.bf16.msra.mxu0 (!%p138_p2), %v567_v0  ;;  %540 = vmatpush3.bf16.msra.mxu1 (!%p138_p2), %v568_v2  ;;  %v573_v7 = vld [vmem:[%s681_s1 + $0x50] sm:$0xff] (!%p138_p2)   ;;  %v574_v8 = vld [vmem:[%s681_s1 + $0x18] sm:$0xff] (!%p138_p2)   ;;  %v576_v12 = vld [vmem:[%s681_s1 + $0x20] sm:$0xff] (!%p138_p2)   ;;  %vm406_vm4 = vcmask (!%p138_p2), 191488  }
   0x8   : > { %523 = vmatprep.subr.bf16.mxu0 (!%p138_p2), %v592_v1  ;;  %541 = vmatprep.subr.bf16.mxu1 (!%p138_p2), %v592_v1  ;;  %v575_v9 = vld [vmem:[%s681_s1 + $0x58] sm:$0xff] (!%p138_p2)   ;;  %v577_v15 = vld [vmem:[%s681_s1 + $0x60] sm:$0xff] (!%p138_p2)   ;;  %v578_v16 = vld [vmem:[%s681_s1 + $0x28] sm:$0xff] (!%p138_p2)  }
   0x9   : > { %535 = vmatprep.mubr.msk.bf16.mxu0 (!%p138_p2), %vm593_vm0, %v592_v1  ;;  %553 = vmatprep.mubr.msk.bf16.mxu1 (!%p138_p2), %vm593_vm0, %v592_v1  ;;  %v579_v17 = vld [vmem:[%s681_s1 + $0x68] sm:$0x3f] (!%p138_p2)   ;;  %v580_v18 = vld [vmem:[%s681_s1 + $0x30] sm:$0x3f] (!%p138_p2)   ;;  %v500_v26 = vld [vmem:[%s682_s2] ss:$0 sm:$0xff] (!%p138_p2) }
   0xa   : > { %v260_v21 = vsel (!%p138_p2), %vm258_vm1, %v579_v17, 0  ;;  %v347_v22 = vsel (!%p138_p2), %vm258_vm1, %v580_v18, 0 }
   0xb   : > { %524 = vmatpush3.bf16.msra.mxu0 (!%p138_p2), %v569_v3  ;;  %542 = vmatpush3.bf16.msra.mxu1 (!%p138_p2), %v570_v4 }
   0xc   : > { %525 = vmatprep.subr.bf16.mxu0 (!%p138_p2), %v592_v1  ;;  %543 = vmatprep.subr.bf16.mxu1 (!%p138_p2), %v592_v1 }
   0xd   : > { %s685_s13 = smov (!%p160_p3, %s461_s13), 1 }
   0xe   : > { %s504_s26 = sshll.u32 %s685_s13, 3  ;;  %s468_s23 = sshll.u32 %s685_s13, 2 }
   0xf   : > { %526 = vmatpush3.bf16.msra.mxu0 %v571_v5  ;;  %544 = vmatpush3.bf16.msra.mxu1 %v572_v6  ;;  %s164_s6 = scalar_lea.vmem %s680_s0, %s504_s26  ;;  %s168_s26 = scalar_lea.vmem %s683_s3, %s468_s23 }
  0x10   : > { %527 = vmatprep.subr.bf16.mxu0 %v592_v1  ;;  %545 = vmatprep.subr.bf16.mxu1 %v592_v1  ;;  %v170_v10 = vld [vmem:[%s164_s6] sm:$0xf]  ;;  %v171_v11 = vld [vmem:[%s164_s6 + $0x4] sm:$0x1] }
  0x11   : > { %v483_v13 = vcombine.low %v170_v10, %v171_v11 }
  0x13   : > { %528 = vmatpush3.bf16.msra.mxu0 %v573_v7  ;;  %546 = vmatpush3.bf16.msra.mxu1 %v574_v8  ;;  %v209_v14 = vshll.u32 %v483_v13, 16  ;;  %v207_v19 = vshrl.u32 %v483_v13, 16 }
  0x14   : > { %529 = vmatprep.subr.bf16.mxu0 %v592_v1  ;;  %547 = vmatprep.subr.bf16.mxu1 %v592_v1 }
  0x15   : > { %v211_v20 = vrot.slane %v209_v14, 1 }
  0x17   : > { %530 = vmatpush3.bf16.msra.mxu0 %v575_v9  ;;  %548 = vmatpush3.bf16.msra.mxu1 %v576_v12  ;;  %v212_v23 = vor.u32 %v211_v20, %v207_v19 }
  0x18   : > { %531 = vmatprep.subr.bf16.mxu0 %v592_v1  ;;  %549 = vmatprep.subr.bf16.mxu1 %v592_v1 }
  0x1b   : > { %532 = vmatpush3.bf16.msra.mxu0 %v577_v15  ;;  %550 = vmatpush3.bf16.msra.mxu1 %v578_v16 }
  0x1c   : > { %533 = vmatprep.subr.bf16.mxu0 %v592_v1  ;;  %551 = vmatprep.subr.bf16.mxu1 %v592_v1 }
  0x1f   : > { %534 = vmatpush3.bf16.msra.mxu0 %v260_v21  ;;  %552 = vmatpush3.bf16.msra.mxu1 %v347_v22 }
  0x22   : > { %536 = vmatmul.mubr.msk.bf16.vlgmr.msra.gmra.mrb[0].mxu0 %vm254_vm2, %v212_v23  ;;  %554 = vmatmul.mubr.msk.bf16.vlgmr.msra.gmra.mrb[0].mxu1 %vm254_vm2, %v170_v10 }
  0xf5   : > { %v296_v24 = vpop.f32.mrb[0].mxu0  ;;  %v383_v25 = vpop.f32.mrb[0].mxu1 }
  0xf6   : > { %v537_v27 = vpop.f32.mrb[1].mxu0  ;;  %v384_v28 = vadd.f32 %v383_v25, %v296_v24  ;;  %v555_v29 = vpop.f32.mrb[1].mxu1 }
  0xf7   : > { %v299_v30 = vpop.f32.mrb[2].mxu0  ;;  %v386_v31 = vpop.f32.mrb[2].mxu1 }
  0xf8   : > { %v538_v32 = vpop.f32.mrb[3].mxu0  ;;  %v396_v33 = vadd.f32 %v500_v26, %v384_v28  ;;  %v556_v34 = vpop.f32.mrb[3].mxu1 }
  0xfa   : > { %v397_v35 = vmin.f32 %v396_v33, 0.0  ;;  %vm402_vm3 = vcmp.gt.f32.partialorder %v396_v33, 0.0 }
  0xfc   : > { %v398_v36 = vmul.f32 1.442695, %v397_v35 }
  0xfe   : > { %582 = vpow2.f32 %v398_v36 }
 0x108   : > { %v583_v37 = vpop.eup %582 }
 0x109   : > { %v501_v38 = vadd.f32 -1.0, %v583_v37 }
 0x10b   : > { %v401_v39 = vmul.f32 1.6732632, %v501_v38 }
 0x10d   : > { %v403_v40 = vsel %vm402_vm3, %v396_v33, %v401_v39 }
 0x10e   : > { %v404_v41 = vmul.f32 1.050701, %v403_v40 }
 0x110   : > { %v405_v42 = vpack.c.bf16 %v404_v41, %v404_v41 }
 0x112   : > { %407 = vst.msk [vmem:[%s168_s26] sm:$0xf] %vm406_vm4, %v405_v42 }
 0x113 PF: > { %s13_s12 = sadd.s32 1, %s590_s12  }
 0x114   : > { %p10_p4 = scmp.ge.s32.totalorder %s13_s12, 4  }
 0x116   :  { %12 = sbr.rel (!%p10_p4) target bundleno = 1 (0x1), region = 63 }

// kernel: _lambda_.5
= control target key start
LH: loop header
LB: loop body
LE: loop exit
PB: predicated region body
PF: predicated region fallthrough
CT: control target
= control target key end

     0   :  { %s522_s12 = smov 0   ;;  %s570_s0 = inlined_call_operand.vmem [shape: bf16[2,5,60], index: 0, kind: input, shape index: {}]   ;;  %s571_s1 = inlined_call_operand.vmem [shape: bf16[2,60,32], index: 1, kind: input, shape index: {}]   ;;  %s572_s2 = inlined_call_operand.vmem [shape: f32[1,32], index: 2, kind: input, shape index: {}]   ;;  %s573_s3 = inlined_call_operand.vmem [shape: bf16[2,4,32], index: 3, kind: output, shape index: {}]  }
   0x1 LB: > { %s407_s13 = sadd.s32 4294967295, %s498_s12   ;;  %p411_p0 = scmp.ge.s32.totalorder %s498_s12, 1  ;;  %s498_s12 = sphi %s522_s12, %s13_s12  }
   0x2   : > { %p136_p1 = scmp.lt.s32.totalorder %s498_s12, 3 }
   0x4   : > { %p137_p2 = pnand %p411_p0, %p136_p1 }
   0x5   : > { %v481_v0 = vld [vmem:[%s571_s1 + $0x20] sm:$0xff] (!%p137_p2)   ;;  %v500_v1 = vmov (!%p137_p2), 0.0   ;;  %v483_v3 = vld [vmem:[%s571_s1 + $0x28] sm:$0xff] (!%p137_p2)   ;;  %p158_p3 = scmp.lt.s32.totalorder (!%p137_p2), %s407_s13, 1  ;;  %vm501_vm0 = vmmov (!%p137_p2), 0   ;;  %v485_v5 = vld [vmem:[%s571_s1 + $0x30] sm:$0xff] (!%p137_p2)  }
   0x6   : > { %140 = sbr.rel (%p137_p2) target bundleno = 266 (0x10a), region = 32  ;;  %447 = vmatprep.subr.bf16.mxu0 (!%p137_p2), %v500_v1  ;;  %459 = vmatprep.subr.bf16.mxu1 (!%p137_p2), %v500_v1  ;;  %v482_v2 = vld [vmem:[%s571_s1] sm:$0xff] (!%p137_p2)   ;;  %v484_v4 = vld [vmem:[%s571_s1 + $0x8] sm:$0xff] (!%p137_p2)   ;;  %v486_v6 = vld [vmem:[%s571_s1 + $0x10] sm:$0xff] (!%p137_p2)   ;;  %vm222_vm1 = vcmask (!%p137_p2), 1045504   ;;  %vm218_vm2 = vcmask (!%p137_p2), 490496  }
   0x7   : > { %448 = vmatpush3.bf16.msra.mxu0 (!%p137_p2), %v481_v0  ;;  %460 = vmatpush3.bf16.msra.mxu1 (!%p137_p2), %v482_v2  ;;  %v487_v7 = vld [vmem:[%s571_s1 + $0x38] sm:$0x3f] (!%p137_p2)   ;;  %v433_v19 = vld [vmem:[%s572_s2] ss:$0 sm:$0xff] (!%p137_p2)  ;;  %vm352_vm4 = vcmask (!%p137_p2), 254976  }
   0x8   : > { %449 = vmatprep.subr.bf16.mxu0 (!%p137_p2), %v500_v1  ;;  %461 = vmatprep.subr.bf16.mxu1 (!%p137_p2), %v500_v1  ;;  %v488_v8 = vld [vmem:[%s571_s1 + $0x18] sm:$0x3f] (!%p137_p2)   ;;  %v224_v10 = vsel (!%p137_p2), %vm222_vm1, %v487_v7, 0 }
   0x9   : > { %455 = vmatprep.mubr.msk.bf16.mxu0 (!%p137_p2), %vm501_vm0, %v500_v1  ;;  %467 = vmatprep.mubr.msk.bf16.mxu1 (!%p137_p2), %vm501_vm0, %v500_v1  ;;  %v293_v12 = vsel (!%p137_p2), %vm222_vm1, %v488_v8, 0 }
   0xb   : > { %450 = vmatpush3.bf16.msra.mxu0 (!%p137_p2), %v483_v3  ;;  %462 = vmatpush3.bf16.msra.mxu1 (!%p137_p2), %v484_v4 }
   0xc   : > { %451 = vmatprep.subr.bf16.mxu0 (!%p137_p2), %v500_v1  ;;  %463 = vmatprep.subr.bf16.mxu1 (!%p137_p2), %v500_v1 }
   0xd   : > { %s575_s13 = smov (!%p158_p3, %s407_s13), 1 }
   0xe   : > { %s412_s30 = sshll.u32 %s575_s13, 2  ;;  %s413_s9 = sshll.u32 %s575_s13, 1 }
   0xf   : > { %s161_s6 = scalar_lea.vmem %s570_s0, %s412_s30  ;;  %452 = vmatpush3.bf16.msra.mxu0 %v485_v5  ;;  %464 = vmatpush3.bf16.msra.mxu1 %v486_v6  ;;  %s165_s14 = scalar_lea.vmem %s573_s3, %s413_s9 }
  0x10   : > { %v167_v9 = vld [vmem:[%s161_s6] sm:$0x7]  ;;  %453 = vmatprep.subr.bf16.mxu0 %v500_v1  ;;  %465 = vmatprep.subr.bf16.mxu1 %v500_v1 }
  0x11   : > { %v422_v11 = vcombine.low %v167_v9, %v167_v9 }
  0x13   : > { %v189_v13 = vshrl.u32 %v422_v11, 16  ;;  %v191_v14 = vshll.u32 %v422_v11, 16  ;;  %454 = vmatpush3.bf16.msra.mxu0 %v224_v10  ;;  %466 = vmatpush3.bf16.msra.mxu1 %v293_v12 }
  0x15   : > { %v193_v15 = vrot.slane %v191_v14, 1 }
  0x16   : > { %468 = vmatmul.mubr.msk.bf16.vlgmr.msra.gmra.mrb[0].mxu1 %vm218_vm2, %v167_v9 }
  0x17   : > { %v194_v16 = vor.u32 %v193_v15, %v189_v13 }
  0x19   : > { %456 = vmatmul.mubr.msk.bf16.vlgmr.msra.gmra.mrb[0].mxu0 %vm218_vm2, %v194_v16 }
  0xe9   : > { %v329_v17 = vpop.f32.mrb[0].mxu1 }
  0xea   : > { %v469_v20 = vpop.f32.mrb[1].mxu1 }
  0xeb   : > { %v332_v23 = vpop.f32.mrb[2].mxu1 }
  0xec   : > { %v260_v18 = vpop.f32.mrb[0].mxu0  ;;  %v470_v25 = vpop.f32.mrb[3].mxu1 }
  0xed   : > { %v330_v21 = vadd.f32 %v329_v17, %v260_v18  ;;  %v457_v22 = vpop.f32.mrb[1].mxu0 }
  0xee   : > { %v263_v24 = vpop.f32.mrb[2].mxu0 }
  0xef   : > { %v342_v26 = vadd.f32 %v433_v19, %v330_v21  ;;  %v458_v27 = vpop.f32.mrb[3].mxu0 }
  0xf1   : > { %v343_v28 = vmin.f32 %v342_v26, 0.0  ;;  %vm348_vm3 = vcmp.gt.f32.partialorder %v342_v26, 0.0 }
  0xf3   : > { %v344_v29 = vmul.f32 1.442695, %v343_v28 }
  0xf5   : > { %490 = vpow2.f32 %v344_v29 }
  0xff   : > { %v491_v30 = vpop.eup %490 }
 0x100   : > { %v434_v31 = vadd.f32 -1.0, %v491_v30 }
 0x102   : > { %v347_v32 = vmul.f32 1.6732632, %v434_v31 }
 0x104   : > { %v349_v33 = vsel %vm348_vm3, %v342_v26, %v347_v32 }
 0x105   : > { %v350_v34 = vmul.f32 1.050701, %v349_v33 }
 0x107   : > { %v351_v35 = vpack.c.bf16 %v350_v34, %v350_v34 }
 0x109   : > { %353 = vst.msk [vmem:[%s165_s14] sm:$0x3] %vm352_vm4, %v351_v35 }
 0x10a PF: > { %s13_s12 = sadd.s32 1, %s498_s12  }
 0x10b   : > { %p10_p4 = scmp.ge.s32.totalorder %s13_s12, 4  }
 0x10d   :  { %12 = sbr.rel (!%p10_p4) target bundleno = 1 (0x1), region = 63 }

// kernel: _lambda_.7
= control target key start
LH: loop header
LB: loop body
LE: loop exit
PB: predicated region body
PF: predicated region fallthrough
CT: control target
= control target key end

     0   :  { %s557_s12 = smov 0   ;;  %s611_s0 = inlined_call_operand.vmem [shape: bf16[2,10,30], index: 0, kind: input, shape index: {}]   ;;  %s612_s1 = inlined_call_operand.vmem [shape: bf16[3,30,96], index: 1, kind: input, shape index: {}]   ;;  %s613_s2 = inlined_call_operand.vmem [shape: f32[1,96], index: 2, kind: input, shape index: {}]   ;;  %s614_s3 = inlined_call_operand.vmem [shape: f32[2,8,96], index: 3, kind: output, shape index: {}]  }
   0x1 LB: > { %s444_s13 = sadd.s32 4294967295, %s533_s12   ;;  %p448_p0 = scmp.ge.s32.totalorder %s533_s12, 1  ;;  %s533_s12 = sphi %s557_s12, %s13_s12  }
   0x2   : > { %p137_p1 = scmp.lt.s32.totalorder %s533_s12, 3 }
   0x4   : > { %p138_p2 = pnand %p448_p0, %p137_p1 }
   0x5   : > { %v518_v0 = vld [vmem:[%s612_s1 + $0x10] sm:$0xff] (!%p138_p2)   ;;  %v535_v1 = vmov (!%p138_p2), 0.0   ;;  %v519_v2 = vld [vmem:[%s612_s1] sm:$0xff] (!%p138_p2)   ;;  %vm208_vm0 = vcmask (!%p138_p2), 1046528   ;;  %v520_v3 = vld [vmem:[%s612_s1 + $0x18] sm:$0x7f] (!%p138_p2)  }
   0x6   : > { %141 = sbr.rel (%p138_p2) target bundleno = 272 (0x110), region = 32  ;;  %484 = vmatprep.subr.bf16.mxu0 (!%p138_p2), %v535_v1  ;;  %492 = vmatprep.subr.bf16.mxu1 (!%p138_p2), %v535_v1  ;;  %v521_v4 = vld [vmem:[%s612_s1 + $0x8] sm:$0x7f] (!%p138_p2)   ;;  %v210_v5 = vsel (!%p138_p2), %vm208_vm0, %v520_v3, 0  ;;  %p160_p3 = scmp.lt.s32.totalorder (!%p138_p2), %s444_s13, 1  ;;  %vm536_vm1 = vmmov (!%p138_p2), 0  }
   0x7   : > { %485 = vmatpush3.bf16.msra.mxu0 (!%p138_p2), %v518_v0  ;;  %493 = vmatpush3.bf16.msra.mxu1 (!%p138_p2), %v519_v2  ;;  %v267_v6 = vsel (!%p138_p2), %vm208_vm0, %v521_v4, 0  ;;  %vm204_vm2 = vcmask (!%p138_p2), 244736   ;;  %v523_v13 = vld [vmem:[%s612_s1 + $0x20] sm:$0xff] (!%p138_p2)   ;;  %v524_v15 = vld [vmem:[%s612_s1 + $0x28] sm:$0x7f] (!%p138_p2)   ;;  %vm389_vm4 = vcmask (!%p138_p2), 785408  }
   0x8   : > { %486 = vmatprep.subr.bf16.mxu0 (!%p138_p2), %v535_v1  ;;  %494 = vmatprep.subr.bf16.mxu1 (!%p138_p2), %v535_v1  ;;  %v330_v16 = vsel (!%p138_p2), %vm208_vm0, %v524_v15, 0  ;;  %v470_v28 = vld [vmem:[%s613_s2] ss:$0 sm:$0xff] (!%p138_p2) }
   0x9   : > { %488 = vmatprep.mubr.msk.bf16.mxu0 (!%p138_p2), %vm536_vm1, %v535_v1  ;;  %496 = vmatprep.mubr.msk.bf16.mxu1 (!%p138_p2), %vm536_vm1, %v535_v1 }
   0xb   : > { %487 = vmatpush3.bf16.msra.mxu0 (!%p138_p2), %v210_v5  ;;  %495 = vmatpush3.bf16.msra.mxu1 (!%p138_p2), %v267_v6 }
   0xc   : > { %500 = vmatprep.subr.bf16.mxu0 (!%p138_p2), %v535_v1 }
   0xd   : > { %s616_s13 = smov (!%p160_p3, %s444_s13), 1 }
   0xe   : > { %s474_s22 = sshll.u32 %s616_s13, 3 }
   0xf   : > { %s164_s25 = scalar_lea.vmem %s611_s0, %s474_s22  ;;  %s168_s7 = scalar_lea.vmem %s614_s3, %s474_s22 }
  0x10   : > { %v170_v7 = vld [vmem:[%s164_s25] sm:$0xf]  ;;  %v171_v8 = vld [vmem:[%s164_s25 + $0x4] sm:$0x1] }
  0x11   : > { %v456_v9 = vcombine.low %v170_v7, %v171_v8  ;;  %497 = vmatmul.mubr.msk.bf16.vlgmr.msra.gmra.mrb[0].mxu1 %vm204_vm2, %v170_v7 }
  0x13   : > { %v187_v10 = vshrl.u32 %v456_v9, 16  ;;  %v189_v11 = vshll.u32 %v456_v9, 16  ;;  %v314_v17 = vrot.slane %v456_v9, 1 }
  0x15   : > { %v191_v12 = vrot.slane %v189_v11, 1 }
  0x17   : > { %v192_v14 = vor.u32 %v191_v12, %v187_v10 }
  0x19   : > { %489 = vmatmul.mubr.msk.bf16.vlgmr.msra.gmra.mrb[0].mxu0 %vm204_vm2, %v192_v14 }
  0x1a   : > { %501 = vmatpush3.bf16.msra.mxu0 %v523_v13  ;;  %504 = vmatprep.mubr.msk.bf16.mxu0 %vm536_vm1, %v535_v1 }
  0x1b   : > { %502 = vmatprep.subr.bf16.mxu0 %v535_v1 }
  0x1e   : > { %503 = vmatpush3.bf16.msra.mxu0 %v330_v16 }
  0x21   : > { %505 = vmatmul.mubr.msk.bf16.vlgmr.msra.gmra.mrb[4].mxu0 %vm204_vm2, %v314_v17 }
  0xe4   : > { %v303_v18 = vpop.f32.mrb[0].mxu1 }
  0xe5   : > { %v498_v19 = vpop.f32.mrb[1].mxu1 }
  0xe6   : > { %v306_v20 = vpop.f32.mrb[2].mxu1 }
  0xe7   : > { %v499_v21 = vpop.f32.mrb[3].mxu1 }
  0xec   : > { %v246_v22 = vpop.f32.mrb[0].mxu0 }
  0xed   : > { %v304_v23 = vadd.f32 %v303_v18, %v246_v22  ;;  %v490_v24 = vpop.f32.mrb[1].mxu0 }
  0xee   : > { %v249_v25 = vpop.f32.mrb[2].mxu0 }
  0xef   : > { %v491_v26 = vpop.f32.mrb[3].mxu0 }
  0xf4   : > { %v366_v27 = vpop.f32.mrb[4].mxu0 }
  0xf5   : > { %v372_v29 = vadd.f32 %v366_v27, %v304_v23  ;;  %v506_v30 = vpop.f32.mrb[5].mxu0 }
  0xf6   : > { %v369_v31 = vpop.f32.mrb[6].mxu0 }
  0xf7   : > { %v380_v32 = vadd.f32 %v470_v28, %v372_v29  ;;  %v507_v33 = vpop.f32.mrb[7].mxu0 }
  0xf9   : > { %v381_v34 = vmin.f32 %v380_v32, 0.0  ;;  %vm386_vm3 = vcmp.gt.f32.partialorder %v380_v32, 0.0 }
  0xfb   : > { %v382_v35 = vmul.f32 1.442695, %v381_v34 }
  0xfd   : > { %525 = vpow2.f32 %v382_v35 }
 0x107   : > { %v526_v36 = vpop.eup %525 }
 0x108   : > { %v471_v37 = vadd.f32 -1.0, %v526_v36 }
 0x10a   : > { %v385_v38 = vmul.f32 1.6732632, %v471_v37 }
 0x10c   : > { %v387_v39 = vsel %vm386_vm3, %v380_v32, %v385_v38 }
 0x10d   : > { %v388_v40 = vmul.f32 1.050701, %v387_v39 }
 0x10f   : > { %390 = vst.msk [vmem:[%s168_s7] sm:$0xff] %vm389_vm4, %v388_v40 }
 0x110 PF: > { %s13_s12 = sadd.s32 1, %s533_s12  }
 0x111   : > { %p10_p4 = scmp.ge.s32.totalorder %s13_s12, 4  }
 0x113   :  { %12 = sbr.rel (!%p10_p4) target bundleno = 1 (0x1), region = 64 }

</bundles_post_ra>
